<compile_context>
chip_gen: v5e
topology: v5e:2x2
jax: 0.10.0
libtpu: 0.0.40
codegen_flags: <defaults>
</compile_context>

<pallas_src>
import jax
import jax.numpy as jnp
from jax.experimental import pallas as pl
from jax.experimental.pallas import tpu as pltpu


def _softplus(x):
    # numerically stable log(1 + exp(x)), same as PyTorch's BCEWithLogits core
    return jnp.maximum(x, 0.0) + jnp.log1p(jnp.exp(-jnp.abs(x)))


def gan_forward_kernel(z_ref, noise_ref, w_ref, b_ref, out_ref):
    z = z_ref[...].astype(jnp.float32)          # [bz, nz]  encoded latent
    noise = noise_ref[...].astype(jnp.float32)  # [bz, nz]  generator noise

    w = w_ref[...].astype(jnp.float32)          # [2, nz] packed weights
    wd_row = w[0:1, :]                          # [1, nz]  discriminator weight
    wg_row = w[1:2, :]                          # [1, nz]  fused gen+disc weight
    bd = b_ref[0]                               # scalar   discriminator bias
    cg = b_ref[1]                               # scalar   fused gen-path bias

    # Discriminator logits as VPU multiply + XLU lane-reduce (no N=1 MXU ops).
    #   logit_enc = latent_z @ wd + bd
    #   logit_gen = gen_z @ wd + bd = noise @ (w1@w2@wd) + (b1@w2@wd + b2@wd + bd)
    logit_enc = jnp.sum(z * wd_row, axis=-1, keepdims=True) + bd      # [bz, 1]
    logit_gen = jnp.sum(noise * wg_row, axis=-1, keepdims=True) + cg  # [bz, 1]

    # BCEWithLogitsLoss (mean reduction):
    #   target = 0 : mean(softplus(x))
    #   target = 1 : mean(softplus(-x))
    bce_gen_zeros = jnp.mean(_softplus(logit_gen))
    bce_enc_ones = jnp.mean(_softplus(-logit_enc))
    bce_gen_ones = jnp.mean(_softplus(-logit_gen))

    loss_lsd = bce_gen_zeros + bce_enc_ones
    loss_lsg = bce_gen_ones

    out_ref[0] = loss_lsd + loss_lsg
    out_ref[1] = loss_lsd
    out_ref[2] = loss_lsg


def gan_forward(latent_z, noise, w1, b1, w2, b2, wd, bd):
    """Returns (loss, loss_lsd, loss_lsg) as scalar f32 arrays.

    Weights are stored already-transposed as [in, out]; the generator and the
    generator->discriminator composition are folded here (no nonlinearity
    between the Linear layers, so this is mathematically identical).
    """
    # Fold: gen_z @ wd + bd == noise @ wg + cg
    wg = w1 @ (w2 @ wd)                     # [nz, 1]
    cg = (b1 @ w2 + b2) @ wd + bd           # [1, 1]

    w_packed = jnp.concatenate([wd.T, wg.T], axis=0).astype(jnp.float32)   # [2, nz]
    b_packed = jnp.concatenate(
        [bd.reshape(1), cg.reshape(1)], axis=0).astype(jnp.float32)        # (2,)

    vmem = pl.BlockSpec(memory_space=pltpu.MemorySpace.VMEM)
    smem = pl.BlockSpec(memory_space=pltpu.MemorySpace.SMEM)

    out = pl.pallas_call(
        gan_forward_kernel,
        out_shape=jax.ShapeDtypeStruct((3,), jnp.float32),
        in_specs=[vmem, vmem, vmem, smem],
        out_specs=smem,
    )(latent_z, noise, w_packed, b_packed)
    return out[0], out[1], out[2]


gan_forward_jit = jax.jit(gan_forward)


def init_params(key, nz):
    """Deterministic init of generator (2 Linear) + discriminator (Linear)."""
    k1, k2, k3, k4, k5, k6 = jax.random.split(key, 6)
    bound = 1.0 / jnp.sqrt(nz)
    # stored as [in, out] (transposed vs. torch's [out, in])
    w1 = jax.random.uniform(k1, (nz, nz), jnp.float32, -bound, bound)
    b1 = jax.random.uniform(k2, (1, nz), jnp.float32, -bound, bound)
    w2 = jax.random.uniform(k3, (nz, nz), jnp.float32, -bound, bound)
    b2 = jax.random.uniform(k4, (1, nz), jnp.float32, -bound, bound)
    wd = jax.random.uniform(k5, (nz, 1), jnp.float32, -bound, bound)
    bd = jax.random.uniform(k6, (1, 1), jnp.float32, -bound, bound)
    return w1, b1, w2, b2, wd, bd


if __name__ == "__main__":
    bz, nz = 8, 32  # small shapes: batch=8, latent_size=32
    key = jax.random.PRNGKey(0)
    k_z, k_noise, k_params = jax.random.split(key, 3)

    latent_z = jax.random.normal(k_z, (bz, nz), jnp.float32)
    noise = jax.random.normal(k_noise, (bz, nz), jnp.float32)  # generate_z noise
    params = init_params(k_params, nz)

    loss, loss_lsd, loss_lsg = gan_forward_jit(latent_z, noise, *params)
    jax.block_until_ready((loss, loss_lsd, loss_lsg))

    # pure-JAX reference check against the ORIGINAL unfused computation
    w1, b1, w2, b2, wd, bd = params
    gen_z = (noise @ w1 + b1) @ w2 + b2
    le = (latent_z @ wd + bd).squeeze(1)
    lg = (gen_z @ wd + bd).squeeze(1)
    sp = lambda x: jnp.maximum(x, 0.0) + jnp.log1p(jnp.exp(-jnp.abs(x)))
    ref_lsd = jnp.mean(sp(lg)) + jnp.mean(sp(-le))
    ref_lsg = jnp.mean(sp(-lg))
    ref_loss = ref_lsd + ref_lsg
    assert jnp.allclose(loss, ref_loss, rtol=1e-4, atol=1e-5)
    assert jnp.allclose(loss_lsd, ref_lsd, rtol=1e-4, atol=1e-5)
    assert jnp.allclose(loss_lsg, ref_lsg, rtol=1e-4, atol=1e-5)

    print("KERNEL_OK")
</pallas_src>

<mosaic_0001>
module attributes {stable_mosaic.version = 11 : i64} {
  func.func @gan_forward_kernel(%arg0: memref<8x32xf32, #tpu.memory_space<vmem>>, %arg1: memref<8x32xf32, #tpu.memory_space<vmem>>, %arg2: memref<2x32xf32, #tpu.memory_space<vmem>>, %arg3: memref<2xf32, #tpu.memory_space<smem>>, %arg4: memref<3xf32, #tpu.memory_space<smem>>) attributes {dimension_semantics = [], scalar_prefetch = 0 : i64, scratch_operands = 0 : i64, tpu.core_type = #tpu.core_type<tc>} {
    %c0 = arith.constant 0 : index
    %c0_0 = arith.constant 0 : index
    %0 = vector.load %arg0[%c0, %c0_0] : memref<8x32xf32, #tpu.memory_space<vmem>>, vector<8x32xf32>
    %c0_1 = arith.constant 0 : index
    %c0_2 = arith.constant 0 : index
    %1 = vector.load %arg1[%c0_1, %c0_2] : memref<8x32xf32, #tpu.memory_space<vmem>>, vector<8x32xf32>
    %c0_3 = arith.constant 0 : index
    %c0_4 = arith.constant 0 : index
    %2 = vector.load %arg2[%c0_3, %c0_4] : memref<2x32xf32, #tpu.memory_space<vmem>>, vector<2x32xf32>
    %3 = vector.extract_strided_slice %2 {offsets = [0, 0], sizes = [1, 32], strides = [1, 1]} : vector<2x32xf32> to vector<1x32xf32>
    %4 = vector.extract_strided_slice %2 {offsets = [1, 0], sizes = [1, 32], strides = [1, 1]} : vector<2x32xf32> to vector<1x32xf32>
    %c0_5 = arith.constant 0 : index
    %5 = memref.load %arg3[%c0_5] : memref<2xf32, #tpu.memory_space<smem>>
    %c1 = arith.constant 1 : index
    %6 = memref.load %arg3[%c1] : memref<2xf32, #tpu.memory_space<smem>>
    %7 = vector.broadcast %3 : vector<1x32xf32> to vector<8x32xf32>
    %8 = arith.mulf %0, %7 : vector<8x32xf32>
    %cst = arith.constant dense<0.000000e+00> : vector<8xf32>
    %9 = vector.multi_reduction <add>, %8, %cst [1] : vector<8x32xf32> to vector<8xf32>
    %10 = vector.shape_cast %9 : vector<8xf32> to vector<8x1xf32>
    %11 = vector.broadcast %5 : f32 to vector<8x1xf32>
    %12 = arith.addf %10, %11 : vector<8x1xf32>
    %13 = vector.broadcast %4 : vector<1x32xf32> to vector<8x32xf32>
    %14 = arith.mulf %1, %13 : vector<8x32xf32>
    %cst_6 = arith.constant dense<0.000000e+00> : vector<8xf32>
    %15 = vector.multi_reduction <add>, %14, %cst_6 [1] : vector<8x32xf32> to vector<8xf32>
    %16 = vector.shape_cast %15 : vector<8xf32> to vector<8x1xf32>
    %17 = vector.broadcast %6 : f32 to vector<8x1xf32>
    %18 = arith.addf %16, %17 : vector<8x1xf32>
    %cst_7 = arith.constant 0.000000e+00 : f32
    %19 = vector.broadcast %cst_7 : f32 to vector<8x1xf32>
    %20 = arith.maximumf %18, %19 : vector<8x1xf32>
    %21 = math.absf %18 : vector<8x1xf32>
    %cst_8 = arith.constant 0.000000e+00 : f32
    %22 = vector.broadcast %cst_8 : f32 to vector<8x1xf32>
    %23 = arith.subf %22, %21 : vector<8x1xf32>
    %24 = math.exp %23 : vector<8x1xf32>
    %25 = math.log1p %24 : vector<8x1xf32>
    %26 = arith.addf %20, %25 : vector<8x1xf32>
    %27 = vector.shape_cast %26 : vector<8x1xf32> to vector<1x8x1xf32>
    %cst_9 = arith.constant dense<0.000000e+00> : vector<1xf32>
    %28 = vector.multi_reduction <add>, %27, %cst_9 [1, 2] : vector<1x8x1xf32> to vector<1xf32>
    %29 = vector.shape_cast %28 : vector<1xf32> to vector<1x1x1xf32>
    %30 = vector.extract %29[0, 0, 0] : f32 from vector<1x1x1xf32>
    %cst_10 = arith.constant 8.000000e+00 : f32
    %31 = arith.divf %30, %cst_10 : f32
    %cst_11 = arith.constant 0.000000e+00 : f32
    %32 = vector.broadcast %cst_11 : f32 to vector<8x1xf32>
    %33 = arith.subf %32, %12 : vector<8x1xf32>
    %cst_12 = arith.constant 0.000000e+00 : f32
    %34 = vector.broadcast %cst_12 : f32 to vector<8x1xf32>
    %35 = arith.maximumf %33, %34 : vector<8x1xf32>
    %36 = math.absf %33 : vector<8x1xf32>
    %cst_13 = arith.constant 0.000000e+00 : f32
    %37 = vector.broadcast %cst_13 : f32 to vector<8x1xf32>
    %38 = arith.subf %37, %36 : vector<8x1xf32>
    %39 = math.exp %38 : vector<8x1xf32>
    %40 = math.log1p %39 : vector<8x1xf32>
    %41 = arith.addf %35, %40 : vector<8x1xf32>
    %42 = vector.shape_cast %41 : vector<8x1xf32> to vector<1x8x1xf32>
    %cst_14 = arith.constant dense<0.000000e+00> : vector<1xf32>
    %43 = vector.multi_reduction <add>, %42, %cst_14 [1, 2] : vector<1x8x1xf32> to vector<1xf32>
    %44 = vector.shape_cast %43 : vector<1xf32> to vector<1x1x1xf32>
    %45 = vector.extract %44[0, 0, 0] : f32 from vector<1x1x1xf32>
    %cst_15 = arith.constant 8.000000e+00 : f32
    %46 = arith.divf %45, %cst_15 : f32
    %cst_16 = arith.constant 0.000000e+00 : f32
    %47 = vector.broadcast %cst_16 : f32 to vector<8x1xf32>
    %48 = arith.subf %47, %18 : vector<8x1xf32>
    %cst_17 = arith.constant 0.000000e+00 : f32
    %49 = vector.broadcast %cst_17 : f32 to vector<8x1xf32>
    %50 = arith.maximumf %48, %49 : vector<8x1xf32>
    %51 = math.absf %48 : vector<8x1xf32>
    %cst_18 = arith.constant 0.000000e+00 : f32
    %52 = vector.broadcast %cst_18 : f32 to vector<8x1xf32>
    %53 = arith.subf %52, %51 : vector<8x1xf32>
    %54 = math.exp %53 : vector<8x1xf32>
    %55 = math.log1p %54 : vector<8x1xf32>
    %56 = arith.addf %50, %55 : vector<8x1xf32>
    %57 = vector.shape_cast %56 : vector<8x1xf32> to vector<1x8x1xf32>
    %cst_19 = arith.constant dense<0.000000e+00> : vector<1xf32>
    %58 = vector.multi_reduction <add>, %57, %cst_19 [1, 2] : vector<1x8x1xf32> to vector<1xf32>
    %59 = vector.shape_cast %58 : vector<1xf32> to vector<1x1x1xf32>
    %60 = vector.extract %59[0, 0, 0] : f32 from vector<1x1x1xf32>
    %cst_20 = arith.constant 8.000000e+00 : f32
    %61 = arith.divf %60, %cst_20 : f32
    %62 = arith.addf %31, %46 : f32
    %63 = arith.addf %62, %61 : f32
    %c0_21 = arith.constant 0 : index
    %64 = memref.load %arg4[%c0_21] : memref<3xf32, #tpu.memory_space<smem>>
    memref.store %63, %arg4[%c0_21] : memref<3xf32, #tpu.memory_space<smem>>
    %c1_22 = arith.constant 1 : index
    %65 = memref.load %arg4[%c1_22] : memref<3xf32, #tpu.memory_space<smem>>
    memref.store %62, %arg4[%c1_22] : memref<3xf32, #tpu.memory_space<smem>>
    %c2 = arith.constant 2 : index
    %66 = memref.load %arg4[%c2] : memref<3xf32, #tpu.memory_space<smem>>
    memref.store %61, %arg4[%c2] : memref<3xf32, #tpu.memory_space<smem>>
    return
  }
}

</mosaic_0001>

<bundles_post_ra>
// kernel: gan_forward.1
= control target key start
LH: loop header
LB: loop body
LE: loop exit
PB: predicated region body
PF: predicated region fallthrough
CT: control target
= control target key end

     0   :  { %9 = vsyncpa [#allocation3], 0  ;;  %s277_s0 = inlined_call_operand.vmem [shape: f32[8,32], index: 0, kind: input, shape index: {}]   ;;  %s278_s1 = inlined_call_operand.vmem [shape: f32[8,32], index: 1, kind: input, shape index: {}]   ;;  %s279_s2 = inlined_call_operand.vmem [shape: f32[2,32], index: 2, kind: input, shape index: {}]   ;;  %s280_s3 = inlined_call_operand.vmem [shape: f32[2], index: 3, kind: input, shape index: {}]   ;;  %s281_s4 = inlined_call_operand.vmem [shape: f32[3], index: 4, kind: output, shape index: {}]  }
   0x1   :  { %10 = vsyncpa [#allocation4], 0  ;;  %s22_s17 = sshll.u32 %s280_s3, 4  ;;  %s234_s18 = smov [#allocation2]   ;;  %s23_s17 = int_to_ptr.vmem [resolvable:$true] %s22_s17 }
   0x2   :  { %25 = dma.vmem_to_smem %s23_s17, 16, %s234_s18, [#allocation3]  }
   0x3   :  { %230 = dma.done.wait [#allocation3], 16  }
   0x4   :  { %231 = vsyncadd [#allocation3], 4294967280 }
   0x5   :  { %30 = sfence }
   0x6   :  { %v31_v0 = vld [vmem:[%s277_s0] sm:$0xff]  ;;  %vm38_vm0 = vcmask 261120   ;;  %s34_s24 = sld [smem:[#allocation2]]  ;;  %vm66_vm3 = vcmask 7168   ;;  %v235_v62 = vmov 8.0   ;;  %s169_s6 = sshll.u32 %s281_s4, 4  ;;  %s170_s6 = int_to_ptr.vmem [resolvable:$true] %s169_s6 }
   0x7   :  { %v33_v1 = vld [vmem:[%s279_s2] sm:$0x3]  ;;  %s180_s0 = sld [smem:[#allocation2 + $0x1]]  ;;  %s236_s9 = smov [#allocation5]  }
   0x8   :  { %v36_v2 = vperm.slane %v33_v1, 0  ;;  %v44_v4 = vperm.slane %v33_v1, 1  ;;  %v32_v5 = vld [vmem:[%s278_s1] sm:$0xff] }
   0xa   :  { %v37_v3 = vmul.f32 %v36_v2, %v31_v0  ;;  %v45_v7 = vmul.f32 %v44_v4, %v32_v5 }
   0xc   :  { %v39_v6 = vsel %vm38_vm0, %v37_v3, 0.0  ;;  %v46_v8 = vsel %vm38_vm0, %v45_v7, 0.0  ;;  %v42_v9 = vstv %s34_s24 }
   0xd   :  { %40 = vadd.xlane.f32.xlu0 %v39_v6  ;;  %v49_v14 = vstv %s180_s0 }
  0x15   :  { %47 = vadd.xlane.f32.xlu0 %v46_v8 }
  0x80   :  { %v41_v10 = vpop.xlane.xlu0 %40 }
  0x81   :  { %v43_v11 = vadd.f32 %v42_v9, %v41_v10 }
  0x83   :  { %v86_v12 = vsub.f32 0.0, %v43_v11 }
  0x85   :  { %v88_v13 = vand.u32 2147483647, %v86_v12  ;;  %v87_v58 = vmax.f32 %v86_v12, 0.0 }
  0x87   :  { %v89_v15 = vsub.f32 0.0, %v88_v13 }
  0x88   :  { %v48_v16 = vpop.xlane.xlu0 %47 }
  0x89   :  { %v90_v17 = vmul.f32 1.442695, %v89_v15  ;;  %v50_v18 = vadd.f32 %v49_v14, %v48_v16 }
  0x8b   :  { %v52_v19 = vand.u32 2147483647, %v50_v18  ;;  %v121_v20 = vsub.f32 0.0, %v50_v18  ;;  %192 = vpow2.f32 %v90_v17  ;;  %v51_v45 = vmax.f32 %v50_v18, 0.0 }
  0x8d   :  { %v53_v21 = vsub.f32 0.0, %v52_v19  ;;  %v123_v22 = vand.u32 2147483647, %v121_v20  ;;  %v122_v52 = vmax.f32 %v121_v20, 0.0 }
  0x8f   :  { %v54_v23 = vmul.f32 1.442695, %v53_v21  ;;  %v124_v24 = vsub.f32 0.0, %v123_v22 }
  0x91   :  { %194 = vpow2.f32 %v54_v23  ;;  %v125_v25 = vmul.f32 1.442695, %v124_v24  ;;  %v193_v26 = vpop.eup %192 }
  0x92   :  { %v92_v27 = vadd.f32 1.0, %v193_v26  ;;  %v95_v35 = vmul.f32 -0.5, %v193_v26  ;;  %v98_v46 = vand.u32 2147483647, %v193_v26 }
  0x93   :  { %196 = vpow2.f32 %v125_v25 }
  0x94   :  { %198 = vlog2.f32 %v92_v27  ;;  %v96_v43 = vadd.f32 1.0, %v95_v35  ;;  %vm99_vm4 = vcmp.lt.f32.partialorder %v98_v46, 0.0004427343 }
  0x96   :  { %v97_v54 = vmul.f32 %v193_v26, %v96_v43 }
  0x97   :  { %v195_v28 = vpop.eup %194 }
  0x98   :  { %v56_v29 = vadd.f32 1.0, %v195_v28  ;;  %v59_v31 = vmul.f32 -0.5, %v195_v28  ;;  %v62_v36 = vand.u32 2147483647, %v195_v28 }
  0x99   :  { %v197_v30 = vpop.eup %196 }
  0x9a   :  { %200 = vlog2.f32 %v56_v29  ;;  %v127_v32 = vadd.f32 1.0, %v197_v30  ;;  %v130_v33 = vmul.f32 -0.5, %v197_v30  ;;  %v60_v34 = vadd.f32 1.0, %v59_v31  ;;  %v199_v37 = vpop.eup %198 }
  0x9b   :  { %v133_v40 = vand.u32 2147483647, %v197_v30  ;;  %vm63_vm1 = vcmp.lt.f32.partialorder %v62_v36, 0.0004427343  ;;  %v94_v50 = vmul.f32 0.6931472, %v199_v37 }
  0x9c   :  { %202 = vlog2.f32 %v127_v32  ;;  %v131_v38 = vadd.f32 1.0, %v130_v33  ;;  %v61_v42 = vmul.f32 %v195_v28, %v60_v34 }
  0x9d   :  { %vm134_vm2 = vcmp.lt.f32.partialorder %v133_v40, 0.0004427343  ;;  %v100_v57 = vsel %vm99_vm4, %v97_v54, %v94_v50  ;;  %204 = vrcp.f32 %v235_v62 }
  0x9e   :  { %v132_v49 = vmul.f32 %v197_v30, %v131_v38  ;;  %v101_v60 = vadd.f32 %v100_v57, %v87_v58 }
  0xa0   :  { %v201_v39 = vpop.eup %200  ;;  %v102_v61 = vsel %vm66_vm3, %v101_v60, 0.0 }
  0xa1   :  { %v58_v41 = vmul.f32 0.6931472, %v201_v39 }
  0xa2   :  { %v203_v44 = vpop.eup %202 }
  0xa3   :  { %v64_v47 = vsel %vm63_vm1, %v61_v42, %v58_v41  ;;  %v129_v48 = vmul.f32 0.6931472, %v203_v44  ;;  %v205_v63 = vpop.eup %204 }
  0xa4   :  { %v65_v51 = vadd.f32 %v64_v47, %v51_v45  ;;  %v78_v0 = vmul.f32 8.0, %v205_v63  ;;  %vm82_vm5 = vweird.f32 %v205_v63 }
  0xa5   :  { %v135_v53 = vsel %vm134_vm2, %v132_v49, %v129_v48 }
  0xa6   :  { %v67_v55 = vsel %vm66_vm3, %v65_v51, 0.0  ;;  %v136_v56 = vadd.f32 %v135_v53, %v122_v52  ;;  %v79_v1 = vsub.f32 1.0, %v78_v0 }
  0xa7   :  { %68 = vadd.xlane.f32.xlu1 %v67_v55 }
  0xa8   :  { %v137_v59 = vsel %vm66_vm3, %v136_v56, 0.0  ;;  %v80_v7 = vmul.f32 %v205_v63, %v79_v1 }
  0xa9   :  { %138 = vadd.xlane.f32.xlu2 %v137_v59 }
  0xaa   :  { %v81_v11 = vadd.f32 %v205_v63, %v80_v7 }
  0xac   :  { %v83_v18 = vsel %vm82_vm5, %v205_v63, %v81_v11 }
  0xaf   :  { %103 = vadd.xlane.f32.xlu1 %v102_v61 }
 0x11a   :  { %v69_v2 = vpop.xlane.xlu1 %68 }
 0x11b   :  { %v70_v3 = vrot.slane %v69_v2, 4 }
 0x11c   :  { %v139_v4 = vpop.xlane.xlu2 %138 }
 0x11d   :  { %v71_v5 = vadd.f32 %v70_v3, %v69_v2  ;;  %v140_v6 = vrot.slane %v139_v4, 4 }
 0x11f   :  { %v72_v8 = vrot.slane %v71_v5, 2  ;;  %v141_v9 = vadd.f32 %v140_v6, %v139_v4 }
 0x121   :  { %v73_v10 = vadd.f32 %v72_v8, %v71_v5  ;;  %v142_v12 = vrot.slane %v141_v9, 2 }
 0x122   :  { %v104_v13 = vpop.xlane.xlu1 %103 }
 0x123   :  { %v105_v14 = vrot.slane %v104_v13, 4  ;;  %v74_v15 = vrot.slane %v73_v10, 1  ;;  %v143_v19 = vadd.f32 %v142_v12, %v141_v9 }
 0x125   :  { %v106_v16 = vadd.f32 %v105_v14, %v104_v13  ;;  %v75_v17 = vadd.f32 %v74_v15, %v73_v10  ;;  %v144_v22 = vrot.slane %v143_v19, 1 }
 0x127   :  { %v107_v20 = vrot.slane %v106_v16, 2  ;;  %181 = vpush %v75_v17  ;;  %v145_v25 = vadd.f32 %v144_v22, %v143_v19 }
 0x128   :  { %183 = vpush %v83_v18 }
 0x129   :  { %v108_v21 = vadd.f32 %v107_v20, %v106_v16 }
 0x12b   :  { %v109_v23 = vrot.slane %v108_v21, 1 }
 0x12d   :  { %v110_v24 = vadd.f32 %v109_v23, %v108_v21 }
 0x12f   :  { %185 = vpush %v110_v24 }
 0x130   :  { %187 = vpush %v145_v25 }
 0x158   :  { %s182_s1 = spop %181 }
 0x159   :  { %s184_s2 = spop %183 }
 0x15a   :  { %s85_s25 = smul.f32 %s184_s2, %s182_s1 }
 0x160   :  { %s186_s26 = spop %185 }
 0x161   :  { %s120_s27 = smul.f32 %s186_s26, %s184_s2  ;;  %s188_s28 = spop %187 }
 0x162   :  { %s155_s29 = smul.f32 %s188_s28, %s184_s2 }
 0x163   :  { %s156_s7 = sadd.f32 %s120_s27, %s85_s25 }
 0x164   :  { %163 = sst [smem:[#allocation5 + $0x2]] %s155_s29 }
 0x165   :  { %161 = sst [smem:[#allocation5 + $0x1]] %s156_s7 }
 0x166   :  { %s157_s8 = sadd.f32 %s156_s7, %s155_s29 }
 0x168   :  { %159 = sst [smem:[#allocation5]] %s157_s8 }
 0x169   :  { %172 = dma.smem_to_vmem %s236_s9, 16, %s170_s6, [#allocation4]  }
 0x16a   :  { %232 = dma.done.wait [#allocation4], 16  }
 0x16b   :  { %233 = vsyncadd [#allocation4], 4294967280 }
 0x16c   :  { %177 = sfence }
 0x16d   :  { %178 = vsyncpa [#allocation3], 1 }
 0x16e   :  { %179 = vsyncpa [#allocation4], 1 }

</bundles_post_ra>
